<compile_context>
chip_gen: v5e
topology: v5e:2x2
jax: 0.10.0
libtpu: 0.0.40
codegen_flags: <defaults>
</compile_context>

<pallas_src>
import math

import jax
import jax.numpy as jnp
from jax.experimental import pallas as pl
from jax.experimental.pallas import tpu as pltpu


def _round_up(x, m):
    return ((x + m - 1) // m) * m


def _vmem_cap_bytes():
    """~75% of physical VMEM (v5e/v6e: 128 MiB, v7x: 64 MiB); conservative fallback."""
    try:
        cap = getattr(pltpu.get_tpu_info(), "vmem_capacity_bytes", None)
        if cap:
            return int(cap) * 3 // 4
    except Exception:
        pass
    return 48 << 20


# ----------------------------------------------------------------------------
# Pallas kernel
# ----------------------------------------------------------------------------
def _noisy_linear_kernel(x_ref, mu_ref, sig_ref, eps_in_ref, eps_out_ref, b_ref,
                         o_ref):
    # x_ref      : (TB, K)   batch tile of the input (any float dtype)
    # mu_ref     : (K, TN)   weight_mu^T tile    (param dtype: bf16 by default)
    # sig_ref    : (K, TN)   weight_sigma^T tile (param dtype)
    # eps_in_ref : (K, 1)    input-noise factor  (f32)
    # eps_out_ref: (1, TN)   output-noise factor (f32, zero-padded lanes)
    # b_ref      : (1, TN)   effective bias = bias_mu + bias_sigma*bias_eps (f32)
    # o_ref      : (TB, TN)  lane-dense output tile
    f32 = jnp.float32
    cdt = mu_ref.dtype                          # MXU input dtype (bf16 or f32)

    # VPU (hidden under the MXU matmul): exact element-wise fold of the effective
    # weight; weight_epsilon is reconstructed from its rank-1 factors in VMEM.
    w_noise = sig_ref[...].astype(f32) * eps_in_ref[...]            # (K,TN)*(K,1)
    w_eff = mu_ref[...].astype(f32) + w_noise * eps_out_ref[...]    # +(K,TN)*(1,TN)

    # MXU: x @ W_eff^T with f32 accumulation.
    h = jnp.dot(x_ref[...].astype(cdt), w_eff.astype(cdt),
                preferred_element_type=f32)

    o_ref[...] = (h + b_ref[...]).astype(o_ref.dtype)


# ----------------------------------------------------------------------------
# One-time parameter staging (cache across forward calls)
# ----------------------------------------------------------------------------
def prepare_noisy_linear_params(weight_mu, weight_sigma, param_dtype=jnp.bfloat16):
    """Transpose weights to (in, out), pad the out/lane axis to a multiple of 128
    and cast to the MXU dtype.  Do this ONCE and cache — a per-call transpose is a
    full extra HBM pass over the dominant (weight) traffic."""
    N, K = weight_mu.shape
    Np = _round_up(max(N, 128), 128)
    pad = ((0, 0), (0, Np - N))
    mu_t = jnp.pad(weight_mu.T.astype(param_dtype), pad)
    sigma_t = jnp.pad(weight_sigma.T.astype(param_dtype), pad)
    return {"mu_t": mu_t, "sigma_t": sigma_t,
            "in_features": K, "out_features": N, "padded_out": Np}


# ----------------------------------------------------------------------------
# Tiling heuristics / VMEM budget
# ----------------------------------------------------------------------------
def _pick_block_n(Np, K, w_bytes):
    budget = 24 << 20                       # mu+sigma tiles, double-buffered
    tn = _round_up(min(Np, 2048), 128)
    while tn > 128 and 4 * K * tn * w_bytes > budget:
        tn = _round_up(tn // 2, 128)
    return max(128, min(tn, Np))


def _pick_block_batch(B, K, TN, x_bytes, out_bytes):
    if B <= 8:
        return B
    # Target ~1 MiB of streamed x per grid step (amortise ~0.35us/step overhead),
    # MXU-friendly multiple of 256, capped by a modest VMEM tile budget.
    target = max(256, _round_up((1 << 20) // max(K * x_bytes, 1), 256))
    budget = 16 << 20
    while target > 256 and 2 * target * (K * x_bytes + TN * out_bytes) > budget:
        target //= 2
    if target >= B:
        return B                            # single full-extent batch block
    return max(8, (target // 8) * 8)


def _vmem_limit_bytes(TB, K, TN, x_bytes, w_bytes, out_bytes):
    resident = 2 * 2 * K * TN * w_bytes     # mu + sigma tiles, double-buffered
    resident += K * 128 * 4                 # eps_in (K,1) block (lane-padded)
    resident += 4 * 8 * TN * 4              # eps_out / bias blocks (sublane-padded)
    tiles = 2 * TB * (K * x_bytes + TN * out_bytes)   # double-buffered x / out
    fold = 3 * K * TN * 4                   # in-kernel f32 w_eff intermediates
    want = resident + tiles + fold + (2 << 20)        # headroom
    return max(4 << 20, min(want, _vmem_cap_bytes()))


# ----------------------------------------------------------------------------
# Forward wrapper
# ----------------------------------------------------------------------------
def noisy_linear_forward(x, prep, eps_in, eps_out, bias_mu, bias_sigma, bias_eps,
                         *, block_batch=None, block_n=None, out_dtype=None):
    f32 = jnp.float32
    K, N, Np = prep["in_features"], prep["out_features"], prep["padded_out"]
    mu_t, sigma_t = prep["mu_t"], prep["sigma_t"]
    B = x.shape[0]
    out_dtype = out_dtype or x.dtype

    x_bytes = jnp.dtype(x.dtype).itemsize
    w_bytes = jnp.dtype(mu_t.dtype).itemsize
    out_bytes = jnp.dtype(out_dtype).itemsize

    # Only O(K + N) staging per call (noise changes every reset_noise()).
    npad = ((0, 0), (0, Np - N))
    eps_in_col = eps_in.reshape(K, 1).astype(f32)
    eps_out_row = jnp.pad(eps_out.reshape(1, N).astype(f32), npad)
    b_eff = bias_mu.astype(f32) + bias_sigma.astype(f32) * bias_eps.astype(f32)
    b_eff = jnp.pad(b_eff.reshape(1, N), npad)

    TN = block_n if block_n is not None else _pick_block_n(Np, K, w_bytes)
    TB = block_batch if block_batch is not None else _pick_block_batch(
        B, K, TN, x_bytes, out_bytes)
    nN, nB = pl.cdiv(Np, TN), pl.cdiv(B, TB)

    out = pl.pallas_call(
        _noisy_linear_kernel,
        out_shape=jax.ShapeDtypeStruct((B, Np), out_dtype),
        grid_spec=pltpu.PrefetchScalarGridSpec(
            num_scalar_prefetch=0,
            # N outer / batch inner: each weight tile is DMA'd once and stays
            # VMEM-resident across the whole batch sweep.
            grid=(nN, nB),
            in_specs=[
                pl.BlockSpec((TB, K), lambda n, b: (b, 0)),   # x (unpadded; ragged last tile masked on store)
                pl.BlockSpec((K, TN), lambda n, b: (0, n)),   # weight_mu^T
                pl.BlockSpec((K, TN), lambda n, b: (0, n)),   # weight_sigma^T
                pl.BlockSpec((K, 1), lambda n, b: (0, 0)),    # eps_in
                pl.BlockSpec((1, TN), lambda n, b: (0, n)),   # eps_out
                pl.BlockSpec((1, TN), lambda n, b: (0, n)),   # effective bias
            ],
            out_specs=pl.BlockSpec((TB, TN), lambda n, b: (b, n)),
        ),
        compiler_params=pltpu.CompilerParams(
            dimension_semantics=("parallel", "parallel"),
            vmem_limit_bytes=_vmem_limit_bytes(TB, K, TN, x_bytes, w_bytes,
                                               out_bytes),
        ),
        cost_estimate=pl.CostEstimate(
            flops=2 * B * K * Np + 3 * K * Np * nB + 2 * B * Np,
            transcendentals=0,
            bytes_accessed=(nN * B * K * x_bytes + 2 * K * Np * w_bytes
                            + B * Np * out_bytes + 4 * (K + 3 * Np)),
        ),
    )(x, mu_t, sigma_t, eps_in_col, eps_out_row, b_eff)

    return out if Np == N else out[:, :N]


# ----------------------------------------------------------------------------
# Reference (exactly the PyTorch forward) and noise helper
# ----------------------------------------------------------------------------
def _scale_noise(key, size):
    v = jax.random.normal(key, (size,), jnp.float32)
    return jnp.sign(v) * jnp.sqrt(jnp.abs(v))


def noisy_linear_ref(x, weight_mu, weight_sigma, bias_mu, bias_sigma,
                     eps_in, eps_out, bias_eps):
    weight_epsilon = jnp.outer(eps_out, eps_in)      # reset_noise()
    w_eff = weight_mu + weight_sigma * weight_epsilon
    b_eff = bias_mu + bias_sigma * bias_eps
    return x @ w_eff.T + b_eff


# ----------------------------------------------------------------------------
if __name__ == "__main__":
    key = jax.random.PRNGKey(0)
    ks = jax.random.split(key, 8)

    batch, in_features, out_features = 44, 128, 256
    std_init = 0.017
    mu_range = 1.0 / math.sqrt(in_features)

    x = jax.random.normal(ks[0], (batch, in_features), jnp.float32)
    weight_mu = jax.random.uniform(ks[1], (out_features, in_features), jnp.float32,
                                   -mu_range, mu_range)
    bias_mu = jax.random.uniform(ks[2], (out_features,), jnp.float32,
                                 -mu_range, mu_range)
    # Element-wise sigmas (as if trained) — NOT the reset_parameters() constant —
    # to verify the kernel honours the full forward semantics.
    weight_sigma = (std_init / math.sqrt(in_features)) * (
        1.0 + 0.5 * jax.random.normal(ks[3], (out_features, in_features),
                                      jnp.float32))
    bias_sigma = (std_init / math.sqrt(out_features)) * (
        1.0 + 0.5 * jax.random.normal(ks[4], (out_features,), jnp.float32))
    eps_in = _scale_noise(ks[5], in_features)
    eps_out = _scale_noise(ks[6], out_features)
    bias_eps = _scale_noise(ks[7], out_features)

    ref = noisy_linear_ref(x, weight_mu, weight_sigma, bias_mu, bias_sigma,
                           eps_in, eps_out, bias_eps)

    ok = True

    # 1) f32 path with explicit small tiles: exercises the (N, batch) grid and a
    #    ragged last batch tile (44 rows over 16-row tiles).
    prep32 = prepare_noisy_linear_params(weight_mu, weight_sigma, jnp.float32)
    y32 = noisy_linear_forward(x, prep32, eps_in, eps_out, bias_mu, bias_sigma,
                               bias_eps, block_batch=16, block_n=128)
    y32 = jax.block_until_ready(y32)
    ok &= (y32.shape == ref.shape) and bool(
        jnp.allclose(y32, ref, atol=1e-3, rtol=1e-3))

    # 2) bf16 MXU path with adaptive tiling (the production configuration).
    prep16 = prepare_noisy_linear_params(weight_mu, weight_sigma, jnp.bfloat16)
    y16 = jax.block_until_ready(
        noisy_linear_forward(x, prep16, eps_in, eps_out, bias_mu, bias_sigma,
                             bias_eps))
    ok &= (y16.shape == ref.shape) and bool(
        jnp.allclose(y16, ref, atol=5e-2, rtol=5e-2))

    if ok:
        print("KERNEL_OK")
    else:
        print("KERNEL_MISMATCH",
              float(jnp.max(jnp.abs(y32 - ref))),
              float(jnp.max(jnp.abs(y16 - ref))))
</pallas_src>

<mosaic_0001>
module attributes {stable_mosaic.version = 11 : i64} {
  func.func @_noisy_linear_kernel(%arg0: i32, %arg1: i32, %arg2: memref<16x128xf32, #tpu.memory_space<vmem>>, %arg3: memref<128x128xf32, #tpu.memory_space<vmem>>, %arg4: memref<128x128xf32, #tpu.memory_space<vmem>>, %arg5: memref<128x1xf32, #tpu.memory_space<vmem>>, %arg6: memref<1x128xf32, #tpu.memory_space<vmem>>, %arg7: memref<1x128xf32, #tpu.memory_space<vmem>>, %arg8: memref<16x128xf32, #tpu.memory_space<vmem>>) attributes {dimension_semantics = [#tpu.dimension_semantics<parallel>, #tpu.dimension_semantics<parallel>], iteration_bounds = array<i64: 2, 3>, scalar_prefetch = 0 : i64, scratch_operands = 0 : i64, tpu.core_type = #tpu.core_type<tc>, window_params = [{transform_indices = @transform_0, window_bounds = array<i64: 16, 128>}, {transform_indices = @transform_1, window_bounds = array<i64: 128, 128>}, {transform_indices = @transform_2, window_bounds = array<i64: 128, 128>}, {pipeline_mode = #tpu.pipeline_mode<synchronous>, transform_indices = @transform_3, window_bounds = array<i64: 128, 1>}, {transform_indices = @transform_4, window_bounds = array<i64: 1, 128>}, {transform_indices = @transform_5, window_bounds = array<i64: 1, 128>}, {transform_indices = @transform_6, window_bounds = array<i64: 16, 128>}]} {
    %c0 = arith.constant 0 : index
    %c0_0 = arith.constant 0 : index
    %0 = vector.load %arg4[%c0, %c0_0] : memref<128x128xf32, #tpu.memory_space<vmem>>, vector<128x128xf32>
    %c0_1 = arith.constant 0 : index
    %c0_2 = arith.constant 0 : index
    %1 = vector.load %arg5[%c0_1, %c0_2] : memref<128x1xf32, #tpu.memory_space<vmem>>, vector<128x1xf32>
    %2 = vector.broadcast %1 : vector<128x1xf32> to vector<128x128xf32>
    %3 = arith.mulf %0, %2 : vector<128x128xf32>
    %c0_3 = arith.constant 0 : index
    %c0_4 = arith.constant 0 : index
    %4 = vector.load %arg3[%c0_3, %c0_4] : memref<128x128xf32, #tpu.memory_space<vmem>>, vector<128x128xf32>
    %c0_5 = arith.constant 0 : index
    %c0_6 = arith.constant 0 : index
    %5 = vector.load %arg6[%c0_5, %c0_6] : memref<1x128xf32, #tpu.memory_space<vmem>>, vector<1x128xf32>
    %6 = vector.broadcast %5 : vector<1x128xf32> to vector<128x128xf32>
    %7 = arith.mulf %3, %6 : vector<128x128xf32>
    %8 = arith.addf %4, %7 : vector<128x128xf32>
    %c0_7 = arith.constant 0 : index
    %c0_8 = arith.constant 0 : index
    %9 = vector.load %arg2[%c0_7, %c0_8] : memref<16x128xf32, #tpu.memory_space<vmem>>, vector<16x128xf32>
    %cst = arith.constant dense<0.000000e+00> : vector<16x128xf32>
    %10 = tpu.matmul %9, %8, %cst {dimension_numbers = #tpu.dot_dimension_numbers<[1], [0], [0], [1], [0, 0, 1, 1], [], []>} : vector<16x128xf32>, vector<128x128xf32>, vector<16x128xf32> -> vector<16x128xf32>
    %c0_9 = arith.constant 0 : index
    %c0_10 = arith.constant 0 : index
    %11 = vector.load %arg7[%c0_9, %c0_10] : memref<1x128xf32, #tpu.memory_space<vmem>>, vector<1x128xf32>
    %12 = vector.broadcast %11 : vector<1x128xf32> to vector<16x128xf32>
    %13 = arith.addf %10, %12 : vector<16x128xf32>
    %c0_11 = arith.constant 0 : index
    %c0_12 = arith.constant 0 : index
    %14 = vector.load %arg8[%c0_11, %c0_12] : memref<16x128xf32, #tpu.memory_space<vmem>>, vector<16x128xf32>
    tpu.vector_store %arg8[%c0_11, %c0_12], %13 {strides = array<i32>} : memref<16x128xf32, #tpu.memory_space<vmem>>, vector<16x128xf32>,
    return
  }
  func.func @transform_0(%arg0: i32, %arg1: i32) -> (i32, i32) {
    %c0_i32 = arith.constant 0 : i32
    %c0_i32_0 = arith.constant 0 : i32
    return %arg1, %c0_i32 : i32, i32
  }
  func.func @transform_1(%arg0: i32, %arg1: i32) -> (i32, i32) {
    %c0_i32 = arith.constant 0 : i32
    %c0_i32_0 = arith.constant 0 : i32
    return %c0_i32, %arg0 : i32, i32
  }
  func.func @transform_2(%arg0: i32, %arg1: i32) -> (i32, i32) {
    %c0_i32 = arith.constant 0 : i32
    %c0_i32_0 = arith.constant 0 : i32
    return %c0_i32, %arg0 : i32, i32
  }
  func.func @transform_3(%arg0: i32, %arg1: i32) -> (i32, i32) {
    %c0_i32 = arith.constant 0 : i32
    %c0_i32_0 = arith.constant 0 : i32
    %c0_i32_1 = arith.constant 0 : i32
    return %c0_i32, %c0_i32_0 : i32, i32
  }
  func.func @transform_4(%arg0: i32, %arg1: i32) -> (i32, i32) {
    %c0_i32 = arith.constant 0 : i32
    %c0_i32_0 = arith.constant 0 : i32
    return %c0_i32, %arg0 : i32, i32
  }
  func.func @transform_5(%arg0: i32, %arg1: i32) -> (i32, i32) {
    %c0_i32 = arith.constant 0 : i32
    %c0_i32_0 = arith.constant 0 : i32
    return %c0_i32, %arg0 : i32, i32
  }
  func.func @transform_6(%arg0: i32, %arg1: i32) -> (i32, i32) {
    %c0_i32 = arith.constant 0 : i32
    return %arg1, %arg0 : i32, i32
  }
}

</mosaic_0001>

<bundles_post_ra>
// kernel: tpu_custom_call.1
= control target key start
LH: loop header
LB: loop body
LE: loop exit
PB: predicated region body
PF: predicated region fallthrough
CT: control target
= control target key end

     0   :  { %s1451_s0 = inlined_call_operand.vmem [shape: f32[44,128], index: 0, kind: input, shape index: {}]   ;;  %s1452_s1 = inlined_call_operand.hbm [shape: f32[128,256], index: 1, kind: input, shape index: {}]   ;;  %s1453_s2 = inlined_call_operand.hbm [shape: f32[128,256], index: 2, kind: input, shape index: {}]   ;;  %s1454_s3 = inlined_call_operand.vmem [shape: f32[128,1], index: 3, kind: input, shape index: {}]   ;;  %s1455_s4 = inlined_call_operand.vmem [shape: f32[1,256], index: 4, kind: input, shape index: {}]   ;;  %s1456_s5 = inlined_call_operand.vmem [shape: f32[1,256], index: 5, kind: input, shape index: {}]   ;;  %s1457_s6 = inlined_call_operand.hbm [shape: f32[44,256], index: 6, kind: output, shape index: {}]  }
   0x1   :  { %1466 = sst [smem:[#allocation21_spill]] %s1452_s1 }
   0x2   :  { %11 = vsyncpa [#allocation3], 0 }
   0x3   :  { %13 = vsyncpa [#allocation3 + $0x1], 0 }
   0x4   :  { %14 = vsyncpa [#allocation6], 0 }
   0x5   :  { %16 = vsyncpa [#allocation6 + $0x1], 0 }
   0x6   :  { %17 = vsyncpa [#allocation4], 0 }
   0x7   :  { %19 = vsyncpa [#allocation4 + $0x1], 0  ;;  %s1131_s21 = smov 0   ;;  %s1133_s22 = smov 0  }
   0x8   :  { %s1135_s23 = smov 0   ;;  %s1137_s24 = smov 0  }
   0x9   :  { %s1139_s25 = smov 0   ;;  %s1141_s26 = smov 0  }
   0xa   :  { %s1143_s27 = smov 0   ;;  %s1145_s28 = smov 0  }
   0xb   :  { %s1147_s29 = smov 0   ;;  %s1149_s30 = smov 0  }
   0xc   :  { %s1151_s7 = smov 0  }
   0xd LB: > { %1467 = sst [smem:[#allocation11_spill]] %s1047_s21  ;;  %s745_s8 = sadd.s32 4294967295, %s1087_s7   ;;  %s1087_s7 = sphi %s1151_s7, %s25_s7   ;;  %s1083_s30 = sphi %s1149_s30, %s1493_s30   ;;  %s1079_s29 = sphi %s1147_s29, %s1492_s29   ;;  %s1075_s28 = sphi %s1145_s28, %s1491_s28   ;;  %s1071_s27 = sphi %s1143_s27, %s1490_s27   ;;  %s1067_s26 = sphi %s1141_s26, %s1489_s26   ;;  %s1063_s25 = sphi %s1139_s25, %s1497_s25   ;;  %s1059_s24 = sphi %s1137_s24, %s1496_s24   ;;  %s1055_s23 = sphi %s1135_s23, %s1487_s23   ;;  %s1051_s22 = sphi %s1133_s22, %s1495_s22   ;;  %s1047_s21 = sphi %s1131_s21, %s1494_s21  }
   0xe   : > { %1468 = sst [smem:[#allocation12_spill]] %s1055_s23  ;;  %s746_s9 = sadd.s32 4294967294, %s1087_s7  }
   0xf   : > { %1469 = sst [smem:[#allocation13_spill]] %s1067_s26  ;;  %s34_s10 = sadd.s32 1, %s1079_s29 }
  0x10   : > { %1470 = sst [smem:[#allocation14_spill]] %s1079_s29  ;;  %s37_s11 = sadd.s32 1, %s1083_s30 }
  0x11   : > { %1471 = sst [smem:[#allocation15_spill]] %s1083_s30  ;;  %p35_p0 = scmp.ge.s32.totalorder %s34_s10, 3 }
  0x12   : > { %s70_s12 = sadd.s32 1, %s1067_s26  ;;  %p77_p1 = scmp.ne.s32.totalorder %s1067_s26, %s1063_s25 }
  0x13   : > { %p78_p2 = scmp.eq.s32.totalorder %s1087_s7, 0  ;;  %s1499_s10 = smov (%p35_p0, %s34_s10), 0 }
  0x14   : > { %1472 = sst [smem:[#allocation16_spill]] %s1499_s10  ;;  %s1501_s11 = smov (!%p35_p0, %s37_s11), %s1083_s30 }
  0x15   : > { %p1195_p3 = por %p78_p2, %p77_p1  ;;  %p83_p4 = scmp.ne.s32.totalorder %s1063_s25, %s1059_s24 }
  0x16   : > { %p39_p5 = scmp.ge.s32.totalorder %s1501_s11, 2  ;;  %p84_p6 = scmp.eq.s32.totalorder %s745_s8, 0 }
  0x17   : > { %s192_s14 = ssub.s32 %s1079_s29, %s1499_s10  ;;  %s197_s15 = sadd.s32 1, %s1055_s23 }
  0x18   : > { %s1503_s11 = smov (%p39_p5, %s1501_s11), 0  ;;  %p1205_p7 = por %p84_p6, %p83_p4 }
  0x19   : > { %1474 = sst [smem:[#allocation17_spill]] %s1503_s11  ;;  %p207_p8 = scmp.ne.s32.totalorder %s1055_s23, %s1051_s22 }
  0x1a   : > { %s67_s17 = ssub.s32 %s1083_s30, %s1503_s11  ;;  %p208_p9 = scmp.eq.s32.totalorder %s745_s8, 5 }
  0x1b   : > { %p68_p10 = scmp.eq.s32.totalorder %s67_s17, 0  ;;  %s194_s18 = sor.u32 %s192_s14, %s67_s17 }
  0x1c   : > { %p195_p11 = scmp.eq.s32.totalorder %s194_s18, 0  ;;  %p1213_p12 = por %p208_p9, %p207_p8 }
  0x1d   : > { %s1218_s20 = scalar_select %p68_p10, %s1067_s26, %s70_s12  }
  0x1e   : > { %s1221_s24 = scalar_select %p195_p11, %s1055_s23, %s197_s15  }
  0x1f   : > { %1477 = sst [smem:[#allocation18_spill]] %s1218_s20  ;;  %p213_p13 = scmp.ne.s32.totalorder %s1051_s22, %s1047_s21 }
  0x20   : > { %1478 = sst [smem:[#allocation19_spill]] %s1221_s24  ;;  %p214_p0 = scmp.eq.s32.totalorder %s746_s9, 5 }
  0x21   : > { %p799_p1 = scmp.lt.s32.totalorder %s1087_s7, 6  ;;  %s1231_s8 = sand.u32 1, %s1067_s26  }
  0x22   : > { %p1226_p2 = por %p214_p0, %p213_p13  ;;  %s749_s14 = sshll.u32 %s1231_s8, 7 }
  0x23   : > { %s750_s17 = sshll.u32 %s1083_s30, 3  ;;  %s1481_s1 = sld [smem:[#allocation21_spill]] }
  0x24   : > { %s1479_s10 = scalar_select %p1226_p2, 1, 0 }
  0x25   : > { %s250_s11 = scalar_lea.vmem [#allocation2], %s749_s14  ;;  %p1240_p4 = pnand %p799_p1, %p1195_p3 }
  0x26   : > { %1480 = sst [smem:[#allocation20_spill]] %s1479_s10  ;;  %s257_s29 = sshll.u32 %s250_s11, 4  ;;  %s258_s29 = int_to_ptr.vmem [resolvable:$true] %s257_s29 }
  0x27   : > { %s247_s26 = scalar_lea.sflag [#allocation3], %s1231_s8  ;;  %s1089_s24 = smov 256  }
  0x28   : > { %s1090_s30 = smov 128   ;;  %s1091_s23 = smov 8  }
  0x29   : > { %s254_s15 = scalar_lea.hbm %s1481_s1, %s750_s17  ;;  %p753_p5 = scmp.ge.s32.totalorder %s1087_s7, 1 }
  0x2a   : > { %s255_s9 = sshll.u32 %s254_s15, 4  ;;  %p298_p6 = scmp.lt.s32.totalorder %s1087_s7, 7  ;;  %s256_s9 = int_to_ptr.hbm [resolvable:$true] %s255_s9 }
  0x2b   : > { %791 = dma.hbm_to_vmem [thread:$0]  (!%p1240_p4), %s256_s9, 2048, %s258_s29, %s247_s26, %s1089_s24, %s1090_s30, %s1091_s23  }
  0x2c   : > { %p299_p8 = pnand %p753_p5, %p298_p6  ;;  %s275_s13 = scalar_lea.hbm %s1453_s2, %s750_s17 }
  0x2d   : > { %s276_s12 = sshll.u32 %s275_s13, 4  ;;  %s271_s15 = scalar_lea.vmem [#allocation5], %s749_s14  ;;  %s277_s12 = int_to_ptr.hbm [resolvable:$true] %s276_s12 }
  0x2e   : > { %s278_s1 = sshll.u32 %s271_s15, 4  ;;  %s268_s10 = scalar_lea.sflag [#allocation6], %s1231_s8  ;;  %s279_s1 = int_to_ptr.vmem [resolvable:$true] %s278_s1 }
  0x2f   : > { %794 = dma.hbm_to_vmem [thread:$0]  (!%p1240_p4), %s277_s12, 2048, %s279_s1, %s268_s10, %s1089_s24, %s1090_s30, %s1091_s23  }
  0x30   : > { %302 = sbr.rel (%p299_p8) target bundleno = 355 (0x163), region = 44  ;;  %s304_s21 = sand.u32 (!%p299_p8), 1, %s1063_s25  }
  0x31   : > { %s754_s26 = sshll.u32 (!%p299_p8), %s304_s21, 7  ;;  %s305_s29 = scalar_lea.sflag (!%p299_p8), [#allocation3], %s304_s21 }
  0x32   : > { %s1256_s9 = scalar_lea.vmem (!%p299_p8), [#allocation2], %s754_s26 }
  0x35   : > { %1034 = dma.done.wait (%p1205_p7), %s305_s29, 2048  }
  0x36   : > { %1036 = vsyncadd (%p1205_p7), %s305_s29, 4294965248  ;;  %s315_s14 = scalar_lea.sflag [#allocation6], %s304_s21  ;;  %s1262_s17 = scalar_lea.vmem [#allocation5], %s754_s26 }
  0x37   : > { %1038 = dma.done.wait (%p1205_p7), %s315_s14, 2048  }
  0x38   : > { %1040 = vsyncadd (%p1205_p7), %s315_s14, 4294965248  ;;  %v1092_v0 = vmov 0   ;;  %p370_p3 = scmp.lt.s32.totalorder %s1075_s28, 1  ;;  %v408_v1 = vld [vmem:[%s1454_s3 + $0x78] sm:$0xff]  ;;  %v406_v2 = vld [vmem:[%s1454_s3 + $0x68] sm:$0xff]  ;;  %s361_s14 = sand.u32 1, %s1051_s22  }
  0x39   : > { %898 = vset.pattern.permute.xlu2 %v1092_v0  ;;  %897 = vset.pattern.permute.xlu1 %v1092_v0  ;;  %v404_v3 = vld [vmem:[%s1454_s3 + $0x58] sm:$0xff]  ;;  %v407_v4 = vld [vmem:[%s1454_s3 + $0x70] sm:$0xff]  ;;  %v405_v5 = vld [vmem:[%s1454_s3 + $0x60] sm:$0xff]  ;;  %s981_s15 = scalar_lea.hbm %s1457_s6, 96 }
  0x3a   : > { %896 = vset.pattern.permute.xlu0 %v1092_v0  ;;  %s1279_s16 = scalar_select %p370_p3, %s1075_s28, 1  ;;  %476 = vperm.xlu1 %897, %v406_v2   ;;  %v403_v6 = vld [vmem:[%s1454_s3 + $0x50] sm:$0xff]  ;;  %v402_v7 = vld [vmem:[%s1454_s3 + $0x48] sm:$0xff]  ;;  %v401_v8 = vld [vmem:[%s1454_s3 + $0x40] sm:$0xff] }
  0x3b   : > { %486 = vperm.xlu0 %896, %v408_v1   ;;  %466 = vperm.xlu2 %898, %v404_v3   ;;  %v400_v9 = vld [vmem:[%s1454_s3 + $0x38] sm:$0xff]  ;;  %v399_v10 = vld [vmem:[%s1454_s3 + $0x30] sm:$0xff]  ;;  %v398_v11 = vld [vmem:[%s1454_s3 + $0x28] sm:$0xff] }
  0x3c   : > { %s372_s11 = scalar_lea.vmem %s1455_s4, %s1279_s16  ;;  %v397_v12 = vld [vmem:[%s1454_s3 + $0x20] sm:$0xff]  ;;  %v396_v13 = vld [vmem:[%s1454_s3 + $0x18] sm:$0xff]  ;;  %v395_v14 = vld [vmem:[%s1454_s3 + $0x10] sm:$0xff]  ;;  %s375_s10 = scalar_lea.vmem %s1456_s5, %s1279_s16 }
  0x3d   : > { %v394_v15 = vld [vmem:[%s1454_s3 + $0x8] sm:$0xff]  ;;  %v393_v16 = vld [vmem:[%s1454_s3] sm:$0xff]  ;;  %v392_v18 = vld [vmem:[%s1262_s17 + $0x78] sm:$0xff] }
  0x3e   : > { %v1334_v19 = vld [vmem:[%s372_s11] ss:$0 sm:$0xff]  ;;  %v520_v24 = vld [vmem:[%s1256_s9 + $0x78] sm:$0xff]  ;;  %v390_v26 = vld [vmem:[%s1262_s17 + $0x68] sm:$0xff]  ;;  %s757_s11 = sshll.u32 %s1071_s27, 1 }
  0x3f   : > { %v391_v28 = vld [vmem:[%s1262_s17 + $0x70] sm:$0xff]  ;;  %v389_v29 = vld [vmem:[%s1262_s17 + $0x60] sm:$0xff]  ;;  %v388_v31 = vld [vmem:[%s1262_s17 + $0x58] sm:$0xff]  ;;  %p1375_p7 = scmp.lt.s32.totalorder %s757_s11, 5 }
  0x40   : > { %v387_v34 = vld [vmem:[%s1262_s17 + $0x50] sm:$0xff]  ;;  %v518_v43 = vld [vmem:[%s1256_s9 + $0x68] sm:$0xff]  ;;  %v385_v47 = vld [vmem:[%s1262_s17 + $0x40] sm:$0xff] }
  0x41   : > { %v519_v38 = vld [vmem:[%s1256_s9 + $0x70] sm:$0xff]  ;;  %v386_v46 = vld [vmem:[%s1262_s17 + $0x48] sm:$0xff]  ;;  %v517_v48 = vld [vmem:[%s1256_s9 + $0x60] sm:$0xff]  ;;  %s1505_s11 = smov (!%p1375_p7, %s757_s11), 5 }
  0x42   : > { %471 = vperm.xlu1 %897, %v405_v5   ;;  %v384_v52 = vld [vmem:[%s1262_s17 + $0x38] sm:$0xff]  ;;  %v515_v59 = vld [vmem:[%s1256_s9 + $0x50] sm:$0xff]  ;;  %v514_v0 = vld [vmem:[%s1256_s9 + $0x48] sm:$0xff]  ;;  %s758_s12 = sshll.u32 %s1505_s11, 3 }
  0x43   : > { %481 = vperm.xlu0 %896, %v407_v4   ;;  %461 = vperm.xlu2 %898, %v403_v6   ;;  %v516_v55 = vld [vmem:[%s1256_s9 + $0x58] sm:$0xff]  ;;  %v381_v1 = vld [vmem:[%s1262_s17 + $0x20] sm:$0xff]  ;;  %v383_v4 = vld [vmem:[%s1262_s17 + $0x30] sm:$0xff]  ;;  %s368_s29 = scalar_lea.vmem %s1451_s0, %s758_s12 }
  0x44   : > { %v382_v5 = vld [vmem:[%s1262_s17 + $0x28] sm:$0xff]  ;;  %v513_v6 = vld [vmem:[%s1256_s9 + $0x40] sm:$0xff] }
  0x4a   : > { %451 = vperm.xlu1 %897, %v401_v8  }
  0x4b   : > { %456 = vperm.xlu0 %896, %v402_v7   ;;  %446 = vperm.xlu2 %898, %v400_v9  }
  0x52   : > { %436 = vperm.xlu1 %897, %v398_v11  }
  0x53   : > { %441 = vperm.xlu0 %896, %v399_v10   ;;  %431 = vperm.xlu2 %898, %v397_v12   ;;  %v512_v12 = vld [vmem:[%s1256_s9 + $0x38] sm:$0xff] }
  0x5a   : > { %421 = vperm.xlu1 %897, %v395_v14  }
  0x5b   : > { %426 = vperm.xlu0 %896, %v396_v13   ;;  %416 = vperm.xlu2 %898, %v394_v15  }
  0x63   : > { %411 = vperm.xlu0 %896, %v393_v16   ;;  %v511_v16 = vld [vmem:[%s1256_s9 + $0x30] sm:$0xff] }
  0x95   : > { %v467_v17 = vpop.permute.xlu2 %466 }
  0x96   : > { %v500_v39 = vmul.f32 %v467_v17, %v388_v31 }
  0x98   : > { %v536_v49 = vmul.f32 %v1334_v19, %v500_v39  ;;  %v507_v39 = vld [vmem:[%s1256_s9 + $0x10] sm:$0xff] }
  0x9a   : > { %v552_v62 = vadd.f32 %v536_v49, %v516_v55 }
  0x9d   : > { %v462_v20 = vpop.permute.xlu2 %461 }
  0x9e   : > { %v499_v42 = vmul.f32 %v462_v20, %v387_v34 }
  0xa0   : > { %v535_v51 = vmul.f32 %v1334_v19, %v499_v42  ;;  %v377_v42 = vld [vmem:[%s1262_s17] sm:$0xff] }
  0xa2   : > { %v551_v3 = vadd.f32 %v535_v51, %v515_v59  ;;  %v557_v51 = vld [vmem:[%s368_s29] sm:$0xff] }
  0xa5   : > { %v447_v37 = vpop.permute.xlu2 %446 }
  0xa6   : > { %v496_v60 = vmul.f32 %v447_v37, %v384_v52  ;;  %v558_v52 = vld [vmem:[%s368_s29 + $0x8] sm:$0xff] }
  0xa8   : > { %v532_v7 = vmul.f32 %v1334_v19, %v496_v60 }
  0xaa   : > { %v548_v20 = vadd.f32 %v532_v7, %v512_v12 }
  0xac   : > { %v477_v22 = vpop.permute.xlu1 %476 }
  0xad   : > { %v487_v21 = vpop.permute.xlu0 %486  ;;  %v502_v30 = vmul.f32 %v477_v22, %v390_v26  ;;  %v432_v63 = vpop.permute.xlu2 %431  ;;  %v510_v22 = vld [vmem:[%s1256_s9 + $0x28] sm:$0xff] }
  0xae   : > { %v504_v23 = vmul.f32 %v487_v21, %v392_v18  ;;  %v493_v9 = vmul.f32 %v432_v63, %v381_v1  ;;  %v378_v26 = vld [vmem:[%s1262_s17 + $0x8] sm:$0xff] }
  0xaf   : > { %v538_v40 = vmul.f32 %v1334_v19, %v502_v30 }
  0xb0   : > { %v540_v25 = vmul.f32 %v1334_v19, %v504_v23  ;;  %v529_v21 = vmul.f32 %v1334_v19, %v493_v9 }
  0xb1   : > { %v554_v50 = vadd.f32 %v538_v40, %v518_v43  ;;  %v506_v43 = vld [vmem:[%s1256_s9 + $0x8] sm:$0xff] }
  0xb2   : > { %v556_v27 = vadd.f32 %v540_v25, %v520_v24  ;;  %v509_v24 = vld [vmem:[%s1256_s9 + $0x20] sm:$0xff] }
  0xb4   : > { %563 = vmatpush.msra.mxu0 %v556_v27  ;;  %766 = vmatpush.msra.mxu1 %v556_v27  ;;  %v472_v33 = vpop.permute.xlu1 %471  ;;  %v380_v27 = vld [vmem:[%s1262_s17 + $0x18] sm:$0xff] }
  0xb5   : > { %v482_v32 = vpop.permute.xlu0 %481  ;;  %v501_v36 = vmul.f32 %v472_v33, %v389_v29  ;;  %v417_v25 = vpop.permute.xlu2 %416 }
  0xb6   : > { %v503_v35 = vmul.f32 %v482_v32, %v391_v28  ;;  %v379_v28 = vld [vmem:[%s1262_s17 + $0x10] sm:$0xff]  ;;  %v545_v32 = vadd.f32 %v529_v21, %v509_v24  ;;  %v490_v33 = vmul.f32 %v417_v25, %v378_v26  ;;  %s765_s17 = sshll.u32 %s1071_s27, 2  ;;  %s589_s27 = scalar_lea.sflag [#allocation4], %s361_s14 }
  0xb7   : > { %v537_v44 = vmul.f32 %v1334_v19, %v501_v36  ;;  %v508_v36 = vld [vmem:[%s1256_s9 + $0x18] sm:$0xff]  ;;  %s600_s1 = sadd.s32 %s1075_s28, %s765_s17 }
  0xb8   : > { %v539_v41 = vmul.f32 %v1334_v19, %v503_v35  ;;  %v526_v40 = vmul.f32 %v1334_v19, %v490_v33  ;;  %s762_s23 = sshll.u32 %s600_s1, 3 }
  0xb9   : > { %v553_v58 = vadd.f32 %v537_v44, %v517_v48  ;;  %v505_v48 = vld [vmem:[%s1256_s9] sm:$0xff]  ;;  %s756_s9 = sshll.u32 %s361_s14, 4  ;;  %s602_s20 = scalar_lea.hbm %s1457_s6, %s762_s23 }
  0xba   : > { %v555_v45 = vadd.f32 %v539_v41, %v519_v38  ;;  %s363_s18 = scalar_lea.vmem [#allocation7], %s756_s9  ;;  %s605_s13 = sshll.u32 %s602_s20, 4  ;;  %s606_s13 = int_to_ptr.hbm [resolvable:$true] %s605_s13 }
  0xbb   : > { %s603_s11 = sshll.u32 %s363_s18, 4  ;;  %s975_s28 = sshra.s32 %s606_s13, 4  ;;  %s604_s11 = int_to_ptr.vmem [resolvable:$true] %s603_s11  ;;  %s976_s28 = int_to_ptr.hbm [resolvable:$true] %s975_s28 }
  0xbc   : > { %564 = vmatpush.msra.mxu0 %v555_v45  ;;  %767 = vmatpush.msra.mxu1 %v555_v45  ;;  %v452_v54 = vpop.permute.xlu1 %451  ;;  %s977_s12 = scalar_lea.hbm %s976_s28, 16  ;;  %p982_p13 = scmp.lt.s32.totalorder %s976_s28, %s1457_s6 }
  0xbd   : > { %v457_v53 = vpop.permute.xlu0 %456  ;;  %v497_v57 = vmul.f32 %v452_v54, %v385_v47  ;;  %v542_v47 = vadd.f32 %v526_v40, %v506_v43  ;;  %p978_p9 = scmp.ne.s32.totalorder %s976_s28, %s977_s12  ;;  %p983_p0 = scmp.lt.s32.totalorder %s981_s15, %s977_s12 }
  0xbe   : > { %v498_v56 = vmul.f32 %v457_v53, %v386_v46  ;;  %565 = vmatpush.msra.mxu0 %v554_v50  ;;  %768 = vmatpush.msra.mxu1 %v554_v50 }
  0xbf   : > { %v533_v2 = vmul.f32 %v1334_v19, %v497_v57  ;;  %p979_p10 = pnand %p978_p9, %p1213_p12  ;;  %p984_p1 = por %p983_p0, %p982_p13 }
  0xc0   : > { %v534_v61 = vmul.f32 %v1334_v19, %v498_v56  ;;  %566 = vmatpush.msra.mxu0 %v553_v58  ;;  %769 = vmatpush.msra.mxu1 %v553_v58 }
  0xc1   : > { %v549_v15 = vadd.f32 %v533_v2, %v513_v6  ;;  %p980_p11 = pneg %p979_p10 }
  0xc2   : > { %567 = vmatpush.msra.mxu0 %v552_v62  ;;  %770 = vmatpush.msra.mxu1 %v552_v62  ;;  %v550_v8 = vadd.f32 %v534_v61, %v514_v0 }
  0xc3   : > { %p985_p4 = pnand %p984_p1, %p980_p11 }
  0xc4   : > { %568 = vmatpush.msra.mxu0 %v551_v3  ;;  %771 = vmatpush.msra.mxu1 %v551_v3  ;;  %v437_v11 = vpop.permute.xlu1 %436 }
  0xc5   : > { %v442_v10 = vpop.permute.xlu0 %441  ;;  %v494_v14 = vmul.f32 %v437_v11, %v382_v5 }
  0xc6   : > { %v495_v13 = vmul.f32 %v442_v10, %v383_v4  ;;  %569 = vmatpush.msra.mxu0 %v550_v8  ;;  %772 = vmatpush.msra.mxu1 %v550_v8 }
  0xc7   : > { %v530_v18 = vmul.f32 %v1334_v19, %v494_v14 }
  0xc8   : > { %v531_v17 = vmul.f32 %v1334_v19, %v495_v13  ;;  %570 = vmatpush.msra.mxu0 %v549_v15  ;;  %773 = vmatpush.msra.mxu1 %v549_v15 }
  0xc9   : > { %v546_v29 = vadd.f32 %v530_v18, %v510_v22 }
  0xca   : > { %571 = vmatpush.msra.mxu0 %v548_v20  ;;  %774 = vmatpush.msra.mxu1 %v548_v20  ;;  %v547_v23 = vadd.f32 %v531_v17, %v511_v16 }
  0xcc   : > { %572 = vmatpush.msra.mxu0 %v547_v23  ;;  %775 = vmatpush.msra.mxu1 %v547_v23  ;;  %v422_v31 = vpop.permute.xlu1 %421 }
  0xcd   : > { %v427_v30 = vpop.permute.xlu0 %426  ;;  %v491_v35 = vmul.f32 %v422_v31, %v379_v28 }
  0xce   : > { %v492_v34 = vmul.f32 %v427_v30, %v380_v27  ;;  %573 = vmatpush.msra.mxu0 %v546_v29  ;;  %776 = vmatpush.msra.mxu1 %v546_v29 }
  0xcf   : > { %v527_v38 = vmul.f32 %v1334_v19, %v491_v35 }
  0xd0   : > { %v528_v37 = vmul.f32 %v1334_v19, %v492_v34  ;;  %574 = vmatpush.msra.mxu0 %v545_v32  ;;  %777 = vmatpush.msra.mxu1 %v545_v32 }
  0xd1   : > { %v543_v44 = vadd.f32 %v527_v38, %v507_v39 }
  0xd2   : > { %v544_v41 = vadd.f32 %v528_v37, %v508_v36 }
  0xd4   : > { %575 = vmatpush.msra.mxu0 %v544_v41  ;;  %778 = vmatpush.msra.mxu1 %v544_v41 }
  0xd5   : > { %v412_v45 = vpop.permute.xlu0 %411 }
  0xd6   : > { %v489_v46 = vmul.f32 %v412_v45, %v377_v42  ;;  %576 = vmatpush.msra.mxu0 %v543_v44  ;;  %779 = vmatpush.msra.mxu1 %v543_v44 }
  0xd8   : > { %v525_v49 = vmul.f32 %v1334_v19, %v489_v46  ;;  %577 = vmatpush.msra.mxu0 %v542_v47  ;;  %780 = vmatpush.msra.mxu1 %v542_v47  ;;  %v900_v19 = vld [vmem:[%s375_s10] ss:$0 sm:$0xff] }
  0xda   : > { %v541_v50 = vadd.f32 %v525_v49, %v505_v48 }
  0xdc   : > { %578 = vmatpush.msra.mxu0 %v541_v50  ;;  %781 = vmatpush.msra.mxu1 %v541_v50 }
  0xdd   : > { %579 = vmatmul.f32.vlgmr.msra.gmra.mxu0 %v557_v51  ;;  %582 = vmatmul.f32.vlgmr.msra.gmra.mxu1 %v558_v52 }
 0x15a   : > { %v580_v53 = vpop.f32.mrf.mxu0  ;;  %v583_v54 = vpop.f32.mrf.mxu1 }
 0x15b   : > { %v581_v55 = vadd.f32 %v900_v19, %v580_v53  ;;  %v584_v56 = vadd.f32 %v900_v19, %v583_v54 }
 0x15d   : > { %586 = vst [vmem:[%s363_s18] sm:$0xff] %v581_v55 }
 0x15e   : > { %587 = vst [vmem:[%s363_s18 + $0x8] sm:$0xff] %v584_v56 }
 0x15f   : > { %988 = shalt.err (!%p985_p4)
}
 0x160   : > { %s1093_s17 = smov 128   ;;  %s1094_s14 = smov 256  }
 0x161   : > { %s1095_s1 = smov 8  }
 0x162   : > { %786 = dma.vmem_to_hbm [thread:$0]  (%p1213_p12), %s604_s11, 256, %s606_s13, %s589_s27, %s1093_s17, %s1094_s14, %s1095_s1  }
 0x163 PF: > { %s1484_s9 = sld [smem:[#allocation11_spill]]  ;;  %p800_p5 = scmp.ge.s32.totalorder %s1087_s7, 2 }
 0x165   : > { %p796_p6 = pnand %p800_p5, %p1226_p2 }
 0x167   : > { %p797_p8 = pneg %p796_p6 }
 0x169   : > { %s620_s30 = sand.u32 1, %s1484_s9  }
 0x16a   : > { %s621_s21 = scalar_lea.sflag [#allocation4], %s620_s30 }
 0x16b   : > { %1042 = dma.done.wait (%p797_p8), %s621_s21, 256  }
 0x16c   : > { %1044 = vsyncadd (%p797_p8), %s621_s21, 4294967040  ;;  %s25_s7 = sadd.s32 1, %s1087_s7   ;;  %s1486_s20 = sld [smem:[#allocation12_spill]] }
 0x16d   : > { %p22_p3 = scmp.ge.s32.totalorder %s25_s7, 8   ;;  %s1487_s23 = sld [smem:[#allocation19_spill]] }
 0x16e   : > { %s1488_s19 = sld [smem:[#allocation13_spill]]  ;;  %s1494_s21 = smov %s1051_s22 }
 0x16f   : > { %s1489_s26 = sld [smem:[#allocation18_spill]]  ;;  %s1496_s24 = smov %s1063_s25 }
 0x170   : > { %s1490_s27 = sld [smem:[#allocation14_spill]]  ;;  %24 = sbr.rel (!%p22_p3) target bundleno = 13 (0xd), region = 111 }
 0x171   : > { %s1491_s28 = sld [smem:[#allocation15_spill]] }
 0x172   : > { %s1492_s29 = sld [smem:[#allocation16_spill]]  ;;  %s1495_s22 = smov %s1486_s20 }
 0x173   : > { %s1493_s30 = sld [smem:[#allocation17_spill]] }
 0x174   : > { %s1497_s25 = smov %s1488_s19 }
 0x175   :  { %627 = vsyncpa [#allocation3], 1 }
 0x176   :  { %629 = vsyncpa [#allocation3 + $0x1], 1 }
 0x177   :  { %630 = vsyncpa [#allocation6], 1 }
 0x178   :  { %632 = vsyncpa [#allocation6 + $0x1], 1 }
 0x179   :  { %633 = vsyncpa [#allocation4], 1 }
 0x17a   :  { %635 = vsyncpa [#allocation4 + $0x1], 1 }

</bundles_post_ra>
